<compile_context>
chip_gen: v5e
topology: v5e:2x2
jax: 0.10.0
libtpu: 0.0.40
codegen_flags: <defaults>
</compile_context>

<pallas_src>
import functools

import jax
import jax.numpy as jnp
from jax.experimental import pallas as pl
from jax.experimental.pallas import tpu as pltpu

VOCAB = 128          # vocab_size (multiple of 128 -> lane-aligned)
N = 3                # the "n" in n-gram
LAPLACE = 1.0        # laplace_smoothing
_SUBLANE = 8         # f32 sublane height; output rows padded to this
_TB = 64             # contexts per grid step (tunable; keep >=4 grid steps
                     # for large batches so v7x's 2 TCs both get work)


def _round_up(x, m):
    return (x + m - 1) // m * m


# ----------------------------------------------------------------------------
# Pallas kernel: for tb flat context indices, gather each count row from the
# VMEM-resident table, apply Laplace smoothing and emit
#   logits = log(counts + laplace) - log(total).
# ----------------------------------------------------------------------------
def _ngram_logits_kernel(ctx_ref, counts_ref, o_ref, rows_ref, *,
                         vocab, laplace, tb):
    # ctx_ref:    SMEM (Bp,) int32 flat context indices (scalar prefetch)
    # counts_ref: VMEM (num_ctx, vocab) f32 resident count table (loaded once)
    # o_ref:      VMEM (tb, vocab) f32 output logits block for grid step i
    # rows_ref:   VMEM (tb, vocab) f32 gather scratch
    base = pl.program_id(0) * tb

    # In-VMEM row gather: one dynamic-sublane (1, vocab) load + one static-row
    # store per context.  No DMA, no `% 8` extraction, no cross-sublane concat.
    for k in range(tb):
        c = ctx_ref[base + k]
        rows_ref[pl.ds(k, 1), :] = counts_ref[pl.ds(c, 1), :]

    rows = rows_ref[...]                                        # (tb, vocab)
    # total_counts[ctx] == vocab*laplace + sum(counts[ctx])  (defaultdict default)
    totals = vocab * laplace + jnp.sum(rows, axis=-1, keepdims=True)  # (tb, 1)
    # Exact log-subtract; the full-row log (EUP) is the irreducible work here.
    o_ref[...] = jnp.log(rows + laplace) - jnp.log(totals)


def _ngram_logits_pallas(counts, ctx_flat, *, vocab, laplace, tb=_TB):
    """counts: (num_ctx, vocab) f32 dense table; ctx_flat: (B,) int32.

    Returns (B, vocab) f32 log-probabilities, one row per context query.
    """
    num_ctx, v = counts.shape
    assert v == vocab and vocab % 128 == 0
    assert counts.dtype == jnp.float32
    # Resident-table strategy: table (double-buffered by the pipeline) must
    # fit comfortably in scoped VMEM on every generation (incl. v7x, 64 MiB).
    # TODO(synk): for vocab large enough that the table no longer fits
    # (e.g. vocab=256 f32 on v7x), fall back to per-row data-dependent DMA
    # (pl.Element rows, large tb) or an int16-stored table with in-kernel cast.
    assert num_ctx * vocab * 4 <= 16 * 1024 * 1024, (
        "count table too large for the VMEM-resident strategy")

    B = ctx_flat.shape[0]
    tb = min(tb, _round_up(B, _SUBLANE))
    pad = (-B) % tb
    ctx_p = ctx_flat.astype(jnp.int32)
    if pad:
        ctx_p = jnp.pad(ctx_p, (0, pad))   # padded queries read row 0; sliced off
    Bp = B + pad

    kernel = functools.partial(
        _ngram_logits_kernel, vocab=vocab, laplace=laplace, tb=tb)

    out = pl.pallas_call(
        kernel,
        out_shape=jax.ShapeDtypeStruct((Bp, vocab), jnp.float32),
        grid_spec=pltpu.PrefetchScalarGridSpec(
            num_scalar_prefetch=1,
            grid=(Bp // tb,),
            in_specs=[
                # Whole table as one block with a constant index_map: Pallas
                # DMAs it once and keeps it resident for every grid step.
                pl.BlockSpec((num_ctx, vocab), lambda i, ctx: (0, 0)),
            ],
            out_specs=pl.BlockSpec((tb, vocab), lambda i, ctx: (i, 0)),
            scratch_shapes=[pltpu.VMEM((tb, vocab), jnp.float32)],
        ),
        compiler_params=pltpu.CompilerParams(
            dimension_semantics=("parallel",),      # v7x: shard batch over 2 TCs
            vmem_limit_bytes=48 * 1024 * 1024,      # headroom for resident table
        ),
    )(ctx_p, counts)
    return out[:B]


# ----------------------------------------------------------------------------
# Forward pass (mirrors NgramModel.forward, including the backoff chain).
# The backoff decision depends only on the *static* prefix length, exactly as
# in the PyTorch control flow; unseen contexts return the Laplace-uniform
# distribution (counts row = 0, total = vocab*laplace), also as in PyTorch.
# ----------------------------------------------------------------------------
def _flatten_ctx(ctx_tokens, n, vocab):
    assert vocab ** (n - 1) < 2 ** 31, "flat context index would overflow int32"
    flat = jnp.zeros(ctx_tokens.shape[:-1], jnp.int32)
    for j in range(n - 1):
        flat = flat * vocab + ctx_tokens[..., j].astype(jnp.int32)
    return flat


def ngram_forward(input_ids, tables, unigram_logits, n=N, vocab=VOCAB,
                  laplace=LAPLACE, use_pallas=True):
    """Single prefix -> (vocab,) logits (same semantics as the PyTorch forward).

    For one-off queries the Pallas kernel is pure launch/table-load latency
    for a 128-float result, so `use_pallas=False` provides the plain-XLA
    gather+log path (perf-review item); the batched kernel is where Pallas wins.
    """
    if n == 1:
        return unigram_logits                      # unigram: precomputed logits
    if input_ids.shape[0] < n - 1:
        # backoff to the (n-1)-gram model
        return ngram_forward(input_ids, tables, unigram_logits, n - 1,
                             vocab, laplace, use_pallas)
    flat = _flatten_ctx(input_ids[-(n - 1):], n, vocab)
    if use_pallas:
        return _ngram_logits_pallas(tables[n], jnp.reshape(flat, (1,)),
                                    vocab=vocab, laplace=laplace)[0]
    row = jnp.take(tables[n], flat, axis=0)
    total = vocab * laplace + jnp.sum(row)
    return jnp.log(row + laplace) - jnp.log(total)


def ngram_forward_batched(prefix_batch, tables, unigram_logits, n=N,
                          vocab=VOCAB, laplace=LAPLACE, tb=_TB):
    """(B, L) prefixes -> (B, vocab) logits in one pallas_call (throughput path)."""
    B, L = prefix_batch.shape
    if n == 1:
        return jnp.broadcast_to(unigram_logits, (B, vocab))
    if L < n - 1:
        return ngram_forward_batched(prefix_batch, tables, unigram_logits,
                                     n - 1, vocab, laplace, tb)
    flat = _flatten_ctx(prefix_batch[:, -(n - 1):], n, vocab)
    return _ngram_logits_pallas(tables[n], flat, vocab=vocab, laplace=laplace,
                                tb=tb)


# ----------------------------------------------------------------------------
# "fit" equivalent (plain-JAX glue): build dense count tables from sequences.
# counts[ctx, next] = number of occurrences of (ctx..., next) in the data.
# ----------------------------------------------------------------------------
def fit_counts(seqs, n, vocab):
    assert vocab ** (n - 1) < 2 ** 31
    num_ctx = vocab ** (n - 1)
    S, L = seqs.shape
    windows = jnp.stack([seqs[:, i:L - n + 1 + i] for i in range(n)], axis=-1)
    windows = windows.reshape(-1, n)               # (num_windows, n)
    ctx = jnp.zeros(windows.shape[0], jnp.int32)
    for j in range(n - 1):
        ctx = ctx * vocab + windows[:, j]
    nxt = windows[:, -1]
    counts = jnp.zeros((num_ctx, vocab), jnp.float32)
    return counts.at[ctx, nxt].add(1.0)


def fit_unigram_logits(seqs, vocab, laplace):
    # Faithful to NgramModel.fit for n==1 (including its unusual
    # normalization): counts[i] = total_counts[i] = vocab*laplace + occ[i],
    # probabilities = (counts + laplace) / (vocab*laplace).
    occ = jnp.zeros((vocab,), jnp.float32).at[seqs.reshape(-1)].add(1.0)
    counts = vocab * laplace + occ
    return jnp.log((counts + laplace) / (vocab * laplace))


# ----------------------------------------------------------------------------
# Pure-JAX reference for correctness checking.
# ----------------------------------------------------------------------------
def ref_forward(input_ids, tables, unigram_logits, n=N,
                vocab=VOCAB, laplace=LAPLACE):
    if n == 1:
        return unigram_logits
    if input_ids.shape[0] < n - 1:
        return ref_forward(input_ids, tables, unigram_logits, n - 1,
                           vocab, laplace)
    ctx = input_ids[-(n - 1):]
    flat = 0
    for j in range(n - 1):
        flat = flat * vocab + int(ctx[j])
    row = tables[n][flat]
    total = vocab * laplace + jnp.sum(row)
    return jnp.log((row + laplace) / total)


if __name__ == "__main__":
    key = jax.random.PRNGKey(0)
    k_data, k_prefix, k_batch = jax.random.split(key, 3)

    # Synthetic "training" corpus (deterministic) -> dense count tables.
    seqs = jax.random.randint(k_data, (4, 64), 0, VOCAB, dtype=jnp.int32)
    tables = {
        3: fit_counts(seqs, 3, VOCAB),             # (VOCAB**2, VOCAB) = 8 MiB
        2: fit_counts(seqs, 2, VOCAB),             # (VOCAB,    VOCAB)
    }
    unigram_logits = fit_unigram_logits(seqs, VOCAB, LAPLACE)
    # TODO(synk): save/_load (text checkpoints) and the tqdm fit loop are
    # host-side bookkeeping with no kernel equivalent; replaced by the dense
    # fit_counts above.

    # ---- single-prefix forward (trigram path), matches PyTorch forward ----
    input_ids = jax.random.randint(k_prefix, (8,), 0, VOCAB, dtype=jnp.int32)
    logits = jax.block_until_ready(
        ngram_forward(input_ids, tables, unigram_logits))
    expected = ref_forward(input_ids, tables, unigram_logits)
    assert logits.shape == (VOCAB,) and logits.dtype == jnp.float32
    assert jnp.allclose(logits, expected, rtol=1e-5, atol=1e-5), (
        "single-query mismatch vs reference")

    # ---- single-query XLA fast path (perf-review item) agrees too ----
    logits_xla = jax.block_until_ready(
        ngram_forward(input_ids, tables, unigram_logits, use_pallas=False))
    assert jnp.allclose(logits_xla, expected, rtol=1e-5, atol=1e-5), (
        "XLA single-query path mismatch vs reference")

    # ---- backoff path (prefix shorter than n-1 -> bigram) ----
    short = input_ids[:1]
    logits_bi = jax.block_until_ready(
        ngram_forward(short, tables, unigram_logits))
    assert jnp.allclose(logits_bi, ref_forward(short, tables, unigram_logits),
                        rtol=1e-5, atol=1e-5), "backoff mismatch vs reference"

    # ---- batched forward: 16 prefixes served by ONE pallas_call ----
    prefix_batch = jax.random.randint(k_batch, (16, 8), 0, VOCAB,
                                      dtype=jnp.int32)
    batched = jax.block_until_ready(
        ngram_forward_batched(prefix_batch, tables, unigram_logits))
    assert batched.shape == (16, VOCAB) and batched.dtype == jnp.float32
    for b in range(16):
        exp_b = ref_forward(prefix_batch[b], tables, unigram_logits)
        assert jnp.allclose(batched[b], exp_b, rtol=1e-5, atol=1e-5), (
            f"batched mismatch vs reference at row {b}")

    print("KERNEL_OK")
</pallas_src>

<mosaic_0001>
module attributes {stable_mosaic.version = 11 : i64} {
  func.func @_ngram_logits_kernel(%arg0: i32, %arg1: memref<8xi32, #tpu.memory_space<smem>>, %arg2: memref<16384x128xf32, #tpu.memory_space<vmem>>, %arg3: memref<8x128xf32, #tpu.memory_space<vmem>>, %arg4: memref<8x128xf32, #tpu.memory_space<vmem>>) attributes {dimension_semantics = [#tpu.dimension_semantics<parallel>], iteration_bounds = array<i64: 1>, scalar_prefetch = 1 : i64, scratch_operands = 1 : i64, tpu.core_type = #tpu.core_type<tc>, window_params = [{pipeline_mode = #tpu.pipeline_mode<synchronous>, transform_indices = @transform_0, window_bounds = array<i64: 16384, 128>}, {transform_indices = @transform_1, window_bounds = array<i64: 8, 128>}]} {
    %c8_i32 = arith.constant 8 : i32
    %0 = arith.muli %arg0, %c8_i32 : i32
    %c0_i32 = arith.constant 0 : i32
    %1 = arith.addi %0, %c0_i32 : i32
    %2 = arith.index_cast %1 : i32 to index
    %3 = memref.load %arg1[%2] : memref<8xi32, #tpu.memory_space<smem>>
    %4 = arith.index_cast %3 : i32 to index
    %c0 = arith.constant 0 : index
    %5 = vector.load %arg2[%4, %c0] : memref<16384x128xf32, #tpu.memory_space<vmem>>, vector<1x128xf32>
    %c0_0 = arith.constant 0 : index
    %c0_1 = arith.constant 0 : index
    %6 = vector.load %arg4[%c0_0, %c0_1] : memref<8x128xf32, #tpu.memory_space<vmem>>, vector<1x128xf32>
    tpu.vector_store %arg4[%c0_0, %c0_1], %5 {strides = array<i32>} : memref<8x128xf32, #tpu.memory_space<vmem>>, vector<1x128xf32>,
    %c1_i32 = arith.constant 1 : i32
    %7 = arith.addi %0, %c1_i32 : i32
    %8 = arith.index_cast %7 : i32 to index
    %9 = memref.load %arg1[%8] : memref<8xi32, #tpu.memory_space<smem>>
    %10 = arith.index_cast %9 : i32 to index
    %c0_2 = arith.constant 0 : index
    %11 = vector.load %arg2[%10, %c0_2] : memref<16384x128xf32, #tpu.memory_space<vmem>>, vector<1x128xf32>
    %c1 = arith.constant 1 : index
    %c0_3 = arith.constant 0 : index
    %12 = vector.load %arg4[%c1, %c0_3] : memref<8x128xf32, #tpu.memory_space<vmem>>, vector<1x128xf32>
    tpu.vector_store %arg4[%c1, %c0_3], %11 {strides = array<i32>} : memref<8x128xf32, #tpu.memory_space<vmem>>, vector<1x128xf32>,
    %c2_i32 = arith.constant 2 : i32
    %13 = arith.addi %0, %c2_i32 : i32
    %14 = arith.index_cast %13 : i32 to index
    %15 = memref.load %arg1[%14] : memref<8xi32, #tpu.memory_space<smem>>
    %16 = arith.index_cast %15 : i32 to index
    %c0_4 = arith.constant 0 : index
    %17 = vector.load %arg2[%16, %c0_4] : memref<16384x128xf32, #tpu.memory_space<vmem>>, vector<1x128xf32>
    %c2 = arith.constant 2 : index
    %c0_5 = arith.constant 0 : index
    %18 = vector.load %arg4[%c2, %c0_5] : memref<8x128xf32, #tpu.memory_space<vmem>>, vector<1x128xf32>
    tpu.vector_store %arg4[%c2, %c0_5], %17 {strides = array<i32>} : memref<8x128xf32, #tpu.memory_space<vmem>>, vector<1x128xf32>,
    %c3_i32 = arith.constant 3 : i32
    %19 = arith.addi %0, %c3_i32 : i32
    %20 = arith.index_cast %19 : i32 to index
    %21 = memref.load %arg1[%20] : memref<8xi32, #tpu.memory_space<smem>>
    %22 = arith.index_cast %21 : i32 to index
    %c0_6 = arith.constant 0 : index
    %23 = vector.load %arg2[%22, %c0_6] : memref<16384x128xf32, #tpu.memory_space<vmem>>, vector<1x128xf32>
    %c3 = arith.constant 3 : index
    %c0_7 = arith.constant 0 : index
    %24 = vector.load %arg4[%c3, %c0_7] : memref<8x128xf32, #tpu.memory_space<vmem>>, vector<1x128xf32>
    tpu.vector_store %arg4[%c3, %c0_7], %23 {strides = array<i32>} : memref<8x128xf32, #tpu.memory_space<vmem>>, vector<1x128xf32>,
    %c4_i32 = arith.constant 4 : i32
    %25 = arith.addi %0, %c4_i32 : i32
    %26 = arith.index_cast %25 : i32 to index
    %27 = memref.load %arg1[%26] : memref<8xi32, #tpu.memory_space<smem>>
    %28 = arith.index_cast %27 : i32 to index
    %c0_8 = arith.constant 0 : index
    %29 = vector.load %arg2[%28, %c0_8] : memref<16384x128xf32, #tpu.memory_space<vmem>>, vector<1x128xf32>
    %c4 = arith.constant 4 : index
    %c0_9 = arith.constant 0 : index
    %30 = vector.load %arg4[%c4, %c0_9] : memref<8x128xf32, #tpu.memory_space<vmem>>, vector<1x128xf32>
    tpu.vector_store %arg4[%c4, %c0_9], %29 {strides = array<i32>} : memref<8x128xf32, #tpu.memory_space<vmem>>, vector<1x128xf32>,
    %c5_i32 = arith.constant 5 : i32
    %31 = arith.addi %0, %c5_i32 : i32
    %32 = arith.index_cast %31 : i32 to index
    %33 = memref.load %arg1[%32] : memref<8xi32, #tpu.memory_space<smem>>
    %34 = arith.index_cast %33 : i32 to index
    %c0_10 = arith.constant 0 : index
    %35 = vector.load %arg2[%34, %c0_10] : memref<16384x128xf32, #tpu.memory_space<vmem>>, vector<1x128xf32>
    %c5 = arith.constant 5 : index
    %c0_11 = arith.constant 0 : index
    %36 = vector.load %arg4[%c5, %c0_11] : memref<8x128xf32, #tpu.memory_space<vmem>>, vector<1x128xf32>
    tpu.vector_store %arg4[%c5, %c0_11], %35 {strides = array<i32>} : memref<8x128xf32, #tpu.memory_space<vmem>>, vector<1x128xf32>,
    %c6_i32 = arith.constant 6 : i32
    %37 = arith.addi %0, %c6_i32 : i32
    %38 = arith.index_cast %37 : i32 to index
    %39 = memref.load %arg1[%38] : memref<8xi32, #tpu.memory_space<smem>>
    %40 = arith.index_cast %39 : i32 to index
    %c0_12 = arith.constant 0 : index
    %41 = vector.load %arg2[%40, %c0_12] : memref<16384x128xf32, #tpu.memory_space<vmem>>, vector<1x128xf32>
    %c6 = arith.constant 6 : index
    %c0_13 = arith.constant 0 : index
    %42 = vector.load %arg4[%c6, %c0_13] : memref<8x128xf32, #tpu.memory_space<vmem>>, vector<1x128xf32>
    tpu.vector_store %arg4[%c6, %c0_13], %41 {strides = array<i32>} : memref<8x128xf32, #tpu.memory_space<vmem>>, vector<1x128xf32>,
    %c7_i32 = arith.constant 7 : i32
    %43 = arith.addi %0, %c7_i32 : i32
    %44 = arith.index_cast %43 : i32 to index
    %45 = memref.load %arg1[%44] : memref<8xi32, #tpu.memory_space<smem>>
    %46 = arith.index_cast %45 : i32 to index
    %c0_14 = arith.constant 0 : index
    %47 = vector.load %arg2[%46, %c0_14] : memref<16384x128xf32, #tpu.memory_space<vmem>>, vector<1x128xf32>
    %c7 = arith.constant 7 : index
    %c0_15 = arith.constant 0 : index
    %48 = vector.load %arg4[%c7, %c0_15] : memref<8x128xf32, #tpu.memory_space<vmem>>, vector<1x128xf32>
    tpu.vector_store %arg4[%c7, %c0_15], %47 {strides = array<i32>} : memref<8x128xf32, #tpu.memory_space<vmem>>, vector<1x128xf32>,
    %c0_16 = arith.constant 0 : index
    %c0_17 = arith.constant 0 : index
    %49 = vector.load %arg4[%c0_16, %c0_17] : memref<8x128xf32, #tpu.memory_space<vmem>>, vector<8x128xf32>
    %cst = arith.constant dense<0.000000e+00> : vector<8xf32>
    %50 = vector.multi_reduction <add>, %49, %cst [1] : vector<8x128xf32> to vector<8xf32>
    %51 = vector.shape_cast %50 : vector<8xf32> to vector<8x1xf32>
    %cst_18 = arith.constant 1.280000e+02 : f32
    %52 = vector.broadcast %cst_18 : f32 to vector<8x1xf32>
    %53 = arith.addf %52, %51 : vector<8x1xf32>
    %cst_19 = arith.constant 1.000000e+00 : f32
    %54 = vector.broadcast %cst_19 : f32 to vector<8x128xf32>
    %55 = arith.addf %49, %54 : vector<8x128xf32>
    %56 = math.log %55 : vector<8x128xf32>
    %57 = math.log %53 : vector<8x1xf32>
    %58 = vector.broadcast %57 : vector<8x1xf32> to vector<8x128xf32>
    %59 = arith.subf %56, %58 : vector<8x128xf32>
    %c0_20 = arith.constant 0 : index
    %c0_21 = arith.constant 0 : index
    %60 = vector.load %arg3[%c0_20, %c0_21] : memref<8x128xf32, #tpu.memory_space<vmem>>, vector<8x128xf32>
    tpu.vector_store %arg3[%c0_20, %c0_21], %59 {strides = array<i32>} : memref<8x128xf32, #tpu.memory_space<vmem>>, vector<8x128xf32>,
    return
  }
  func.func @transform_0(%arg0: i32, %arg1: memref<8xi32, #tpu.memory_space<smem>>) -> (i32, i32) {
    %c0_i32 = arith.constant 0 : i32
    %c0_i32_0 = arith.constant 0 : i32
    %c0_i32_1 = arith.constant 0 : i32
    return %c0_i32, %c0_i32_0 : i32, i32
  }
  func.func @transform_1(%arg0: i32, %arg1: memref<8xi32, #tpu.memory_space<smem>>) -> (i32, i32) {
    %c0_i32 = arith.constant 0 : i32
    %c0_i32_0 = arith.constant 0 : i32
    return %arg0, %c0_i32 : i32, i32
  }
}

</mosaic_0001>

<bundles_post_ra>
// kernel: tpu_custom_call.1
= control target key start
LH: loop header
LB: loop body
LE: loop exit
PB: predicated region body
PF: predicated region fallthrough
CT: control target
= control target key end

     0   :  { %s192_s12 = smov [#allocation4]   ;;  %s221_s0 = inlined_call_operand.hbm [shape: s32[8], index: 0, kind: input, shape index: {}]   ;;  %s222_s1 = inlined_call_operand.hbm [shape: f32[16384,128], index: 1, kind: input, shape index: {}]   ;;  %s223_s2 = inlined_call_operand.hbm [shape: f32[8,128], index: 2, kind: output, shape index: {}]  }
   0x1   :  { %s8_s11 = sshll.u32 %s221_s0, 4  ;;  %s9_s11 = int_to_ptr.hbm [resolvable:$true] %s8_s11 }
   0x2   :  { %11 = dma.hbm_to_smem %s9_s11, 16, %s192_s12, [#allocation3] }
   0x3   :  { %186 = dma.done.wait [#allocation3], 16 }
   0x4   :  { %187 = vsyncadd [#allocation3], 4294967280 }
   0x5   :  { %14 = sfence }
   0x6   :  { %15 = vsyncpa [#allocation6], 0 }
   0x7   :  { %16 = vsyncpa [#allocation7], 0  ;;  %s21_s15 = sshll.u32 %s222_s1, 4  ;;  %s193_s16 = smov [#allocation5]   ;;  %s22_s15 = int_to_ptr.hbm [resolvable:$true] %s21_s15 }
   0x8   :  { %s23_s17 = sshll.u32 %s193_s16, 4  ;;  %s194_s18 = smov 128   ;;  %s24_s17 = int_to_ptr.vmem [resolvable:$true] %s23_s17 }
   0x9   :  { %s195_s19 = smov 8  }
   0xa   :  { %29 = dma.hbm_to_vmem [thread:$0]  %s22_s15, 262144, %s24_s17, [#allocation6], %s194_s18, %s194_s18, %s195_s19  }
   0xb   :  { %188 = dma.done.wait [#allocation6], 262144  }
   0xc   :  { %189 = vsyncadd [#allocation6], 4294705152  ;;  %s35_s0 = sld [smem:[#allocation4]]  ;;  %s196_s6 = smov [#allocation8]  }
   0xd   :  { %s110_s20 = sld [smem:[#allocation4 + $0x1]]  ;;  %s90_s7 = sshll.u32 %s196_s6, 4  ;;  %s91_s7 = int_to_ptr.vmem [resolvable:$true] %s90_s7 }
   0xe   :  { %s111_s21 = sld [smem:[#allocation4 + $0x2]]  ;;  %s92_s10 = sshll.u32 %s223_s2, 4  ;;  %s93_s10 = int_to_ptr.hbm [resolvable:$true] %s92_s10 }
   0xf   :  { %s112_s22 = sld [smem:[#allocation4 + $0x3]] }
  0x10   :  { %s113_s23 = sld [smem:[#allocation4 + $0x4]] }
  0x11   :  { %s114_s24 = sld [smem:[#allocation4 + $0x5]] }
  0x12   :  { %s115_s25 = sld [smem:[#allocation4 + $0x6]]  ;;  %s36_s26 = scalar_lea.vmem [#allocation5], %s35_s0 }
  0x13   :  { %v37_v0 = vld [vmem:[%s36_s26] sm:$0x1]  ;;  %s116_s27 = sld [smem:[#allocation4 + $0x7]]  ;;  %s41_s1 = scalar_lea.vmem [#allocation5], %s110_s20 }
  0x14   :  { %38 = vst [vmem:[#allocation2] sm:$0x1] %v37_v0  ;;  %v42_v1 = vld [vmem:[%s41_s1] sm:$0x1]  ;;  %s46_s28 = scalar_lea.vmem [#allocation5], %s111_s21 }
  0x15   :  { %43 = vst [vmem:[#allocation2 + $0x1] sm:$0x1] %v42_v1  ;;  %v47_v2 = vld [vmem:[%s46_s28] sm:$0x1]  ;;  %s51_s29 = scalar_lea.vmem [#allocation5], %s112_s22 }
  0x16   :  { %48 = vst [vmem:[#allocation2 + $0x2] sm:$0x1] %v47_v2  ;;  %v52_v3 = vld [vmem:[%s51_s29] sm:$0x1]  ;;  %s56_s30 = scalar_lea.vmem [#allocation5], %s113_s23 }
  0x17   :  { %53 = vst [vmem:[#allocation2 + $0x3] sm:$0x1] %v52_v3  ;;  %v57_v4 = vld [vmem:[%s56_s30] sm:$0x1]  ;;  %s61_s3 = scalar_lea.vmem [#allocation5], %s114_s24 }
  0x18   :  { %58 = vst [vmem:[#allocation2 + $0x4] sm:$0x1] %v57_v4  ;;  %v62_v5 = vld [vmem:[%s61_s3] sm:$0x1]  ;;  %s66_s4 = scalar_lea.vmem [#allocation5], %s115_s25 }
  0x19   :  { %63 = vst [vmem:[#allocation2 + $0x5] sm:$0x1] %v62_v5  ;;  %v67_v6 = vld [vmem:[%s66_s4] sm:$0x1]  ;;  %s71_s5 = scalar_lea.vmem [#allocation5], %s116_s27 }
  0x1a   :  { %68 = vst [vmem:[#allocation2 + $0x6] sm:$0x1] %v67_v6  ;;  %v72_v7 = vld [vmem:[%s71_s5] sm:$0x1] }
  0x1b   :  { %73 = vst [vmem:[#allocation2 + $0x7] sm:$0x1] %v72_v7 }
  0x22   :  { %v74_v8 = vld [vmem:[#allocation2] sm:$0xff] }
  0x23   :  { %75 = vadd.xlane.f32.xlu0 %v74_v8  ;;  %v78_v9 = vadd.f32 1.0, %v74_v8 }
  0x25   :  { %122 = vlog2.f32 %v78_v9 }
  0x2b   :  { %v123_v12 = vpop.eup %122 }
  0x2c   :  { %v80_v13 = vmul.f32 0.6931472, %v123_v12 }
  0x96   :  { %v76_v10 = vpop.xlane.xlu0 %75 }
  0x97   :  { %v77_v11 = vadd.f32 128.0, %v76_v10 }
  0x99   :  { %124 = vlog2.f32 %v77_v11 }
  0x9f   :  { %v125_v14 = vpop.eup %124 }
  0xa0   :  { %v82_v15 = vmul.f32 0.6931472, %v125_v14 }
  0xa2   :  { %v83_v16 = vsub.f32 %v80_v13, %v82_v15 }
  0xa4   :  { %84 = vst [vmem:[#allocation8] sm:$0xff] %v83_v16 }
  0xa5   :  { %95 = dma.vmem_to_hbm [thread:$0]  %s91_s7, 128, %s93_s10, [#allocation7]  }
  0xa6   :  { %190 = dma.done.wait [#allocation7], 128  }
  0xa7   :  { %191 = vsyncadd [#allocation7], 4294967168 }
  0xa8   :  { %100 = vsyncpa [#allocation6], 1 }
  0xa9   :  { %101 = vsyncpa [#allocation7], 1 }

</bundles_post_ra>
